<compile_context>
chip_gen: v7x
topology: tpu7x:2x2x1
jax: 0.10.0
libtpu: 0.0.40
codegen_flags: <defaults>
</compile_context>

<pallas_src>
import functools

import jax
import jax.numpy as jnp
import numpy as np
from jax.experimental import pallas as pl
from jax.experimental.pallas import tpu as pltpu


def _sigmoid(z):
    # sigmoid(z) = 0.5*tanh(z/2) + 0.5 : single EUP op, no overflow branches.
    return 0.5 * jnp.tanh(0.5 * z) + 0.5


def _shuffle_attention_kernel(x_ref, p_ref, o_ref, *, hw, cpg, eps):
    """One grid step = one (batch, shuffle-half) slab of shape (c//2, hw_pad).

    x_ref: (1, rows, hw_pad)  input channels [r*rows, (r+1)*rows)
    p_ref: (5, rows, 1)       packed per-channel coeffs [A, Bm, B0, sge_w, sge_b]
    o_ref: (1, rows, hw_pad)  lanes [r*hw_pad, (r+1)*hw_pad) of the shuffled
                              (b, c//2, 2*hw_pad) output
    """
    x = x_ref[0].astype(jnp.float32)                       # (rows, hw_pad)
    rows = x.shape[0]
    g_half = rows // cpg                                   # SGE groups per slab

    a_coef = p_ref[0]                                      # (rows, 1) f32
    bm_coef = p_ref[1]
    b0_coef = p_ref[2]
    sge_w = p_ref[3]
    sge_b = p_ref[4]

    inv_hw = jnp.float32(1.0 / hw)

    # ---- fused channel-attention / GroupNorm + spatial-attention gate ------
    # Per-row stats over the true hw (zero lane padding adds nothing to sums).
    row_sum = jnp.sum(x, axis=1, keepdims=True)
    row_sq = jnp.sum(x * x, axis=1, keepdims=True)
    mean = row_sum * inv_hw
    var = jnp.maximum(row_sq * inv_hw - mean * mean, 0.0)  # biased == GroupNorm
    xhat = (x - mean) * jax.lax.rsqrt(var + eps)

    # channel rows: A = 0,          Bm = cweight,  B0 = cbias
    # spatial rows: A = sw * gnw,   Bm = 0,        B0 = sw * gnb + sb
    row_bias = bm_coef * mean + b0_coef                    # hoisted per-row term
    gate0 = _sigmoid(a_coef * xhat + row_bias)
    out_pre = x * gate0                                    # (rows, hw_pad)

    # ---- SpatialGroupEnhance (each group = cpg consecutive rows) ------------
    chan_mean = jnp.sum(out_pre, axis=1, keepdims=True) * inv_hw   # (rows, 1)
    prod = out_pre * chan_mean                                     # (rows, hw_pad)

    hi = jax.lax.Precision.HIGHEST
    # Group-sum over the cpg rows of each group via a 0/1 selector matmul (MXU).
    ch_i = jax.lax.broadcasted_iota(jnp.int32, (g_half, rows), 1)
    gr_i = jax.lax.broadcasted_iota(jnp.int32, (g_half, rows), 0)
    S = jnp.logical_and(ch_i >= gr_i * cpg,
                        ch_i < (gr_i + 1) * cpg).astype(jnp.float32)
    xn = jnp.dot(S, prod, preferred_element_type=jnp.float32,
                 precision=hi)                                     # (g_half, hw_pad)

    # Per-group spatial standardization (torch .std -> ddof=1, no eps).
    xn_sum = jnp.sum(xn, axis=1, keepdims=True)
    xn_sq = jnp.sum(xn * xn, axis=1, keepdims=True)
    m = xn_sum * inv_hw
    ssq = jnp.maximum(xn_sq - jnp.float32(hw) * m * m, 0.0)
    inv_std = jax.lax.rsqrt(ssq * jnp.float32(1.0 / (hw - 1)))
    t = (xn - m) * inv_std                                         # (g_half, hw_pad)

    # Broadcast per-group t back to channels with the transposed selector; the
    # per-channel SGE scale is folded into the selector so the broadcast matmul
    # also applies it for free on the MXU.
    ch_j = jax.lax.broadcasted_iota(jnp.int32, (rows, g_half), 0)
    gr_j = jax.lax.broadcasted_iota(jnp.int32, (rows, g_half), 1)
    selE = jnp.logical_and(ch_j >= gr_j * cpg, ch_j < (gr_j + 1) * cpg)
    Ew = selE.astype(jnp.float32) * sge_w                          # (rows, g_half)
    gate1 = _sigmoid(jnp.dot(Ew, t, preferred_element_type=jnp.float32,
                             precision=hi) + sge_b)                # (rows, hw_pad)

    o_ref[0] = (out_pre * gate1).astype(o_ref.dtype)


def shuffle_attention(x, params, G):
    b, c, h, w = x.shape
    assert c % (2 * G) == 0, "channel must be divisible by 2*G"
    cpg = c // G
    half = cpg // 2
    # channel_shuffle(groups=2) is fused via the half-split grid axis; each SGE
    # group must lie entirely in one half, which requires an even G.
    assert G % 2 == 0, "fused channel_shuffle path needs an even G"
    rows = c // 2
    assert rows % 8 == 0, "c//2 must be a multiple of 8 for (8,128) tiling"

    hw = h * w
    hw_pad = ((hw + 127) // 128) * 128          # lane-dense last dim

    x_r = x.reshape(b, c, hw)
    if hw_pad != hw:
        x_r = jnp.pad(x_r, ((0, 0), (0, 0), (0, hw_pad - hw)))

    f32 = jnp.float32
    cw = params["cweight"].reshape(half).astype(f32)
    cb = params["cbias"].reshape(half).astype(f32)
    sw = params["sweight"].reshape(half).astype(f32)
    sb = params["sbias"].reshape(half).astype(f32)
    gnw = params["gn_weight"].reshape(half).astype(f32)
    gnb = params["gn_bias"].reshape(half).astype(f32)
    sgew = params["sge_weight"].reshape(G).astype(f32)
    sgeb = params["sge_bias"].reshape(G).astype(f32)

    # Per-channel fused gate coefficients: gate0 = sigmoid(A*xhat + Bm*mean + B0).
    a_grp = jnp.concatenate([jnp.zeros((half,), f32), sw * gnw])
    bm_grp = jnp.concatenate([cw, jnp.zeros((half,), f32)])
    b0_grp = jnp.concatenate([cb, sw * gnb + sb])
    A = jnp.tile(a_grp, G)                       # (c,)
    Bm = jnp.tile(bm_grp, G)
    B0 = jnp.tile(b0_grp, G)
    sge_w_ch = jnp.repeat(sgew, cpg)             # per-channel SGE affine
    sge_b_ch = jnp.repeat(sgeb, cpg)
    P = jnp.stack([A, Bm, B0, sge_w_ch, sge_b_ch], axis=0).reshape(5, c, 1)
    P = P.astype(f32)

    kernel = functools.partial(_shuffle_attention_kernel,
                               hw=hw, cpg=cpg, eps=1e-5)

    out = pl.pallas_call(
        kernel,
        out_shape=jax.ShapeDtypeStruct((b, rows, 2 * hw_pad), x.dtype),
        grid=(b, 2),
        in_specs=[
            pl.BlockSpec((1, rows, hw_pad), lambda i, r: (i, r, 0)),
            pl.BlockSpec((5, rows, 1), lambda i, r: (0, r, 0)),
        ],
        # channel_shuffle fused: half r of the pre-shuffle channels lands in
        # lanes [r*hw_pad, (r+1)*hw_pad) so the final reshape is layout-free.
        out_specs=pl.BlockSpec((1, rows, hw_pad), lambda i, r: (i, 0, r)),
        compiler_params=pltpu.CompilerParams(
            dimension_semantics=("parallel", "parallel"),
            vmem_limit_bytes=32 * 1024 * 1024),
    )(x_r, P)

    if hw_pad != hw:
        out = out.reshape(b, rows, 2, hw_pad)[..., :hw]
    return out.reshape(b, c, h, w)


def shuffle_attention_reference(x, params, G):
    """Pure-JAX mirror of the PyTorch forward, used to validate the kernel."""
    b, c, h, w = x.shape
    half = c // (2 * G)
    xg = x.reshape(b * G, c // G, h, w)
    x0, x1 = xg[:, :half], xg[:, half:]

    r = lambda v: v.reshape(1, half, 1, 1)
    x_channel = x0 * jax.nn.sigmoid(
        r(params["cweight"]) * x0.mean(axis=(2, 3), keepdims=True)
        + r(params["cbias"]))

    mu = x1.mean(axis=(2, 3), keepdims=True)
    var = x1.var(axis=(2, 3), keepdims=True)
    xhat = (x1 - mu) / jnp.sqrt(var + 1e-5)
    xgn = xhat * r(params["gn_weight"]) + r(params["gn_bias"])
    x_spatial = x1 * jax.nn.sigmoid(r(params["sweight"]) * xgn + r(params["sbias"]))

    out = jnp.concatenate([x_channel, x_spatial], axis=1).reshape(b, c, h, w)

    # SpatialGroupEnhance(groups=G)
    xg2 = out.reshape(b * G, c // G, h, w)
    xn = (xg2 * xg2.mean(axis=(2, 3), keepdims=True)).sum(axis=1, keepdims=True)
    t = xn.reshape(b * G, -1)
    t = t - t.mean(axis=1, keepdims=True)
    std = jnp.std(t, axis=1, keepdims=True, ddof=1)
    t = (t / std).reshape(b, G, h, w)
    t = t * params["sge_weight"].reshape(1, G, 1, 1) \
          + params["sge_bias"].reshape(1, G, 1, 1)
    xg2 = xg2 * jax.nn.sigmoid(t.reshape(b * G, 1, h, w))
    out = xg2.reshape(b, c, h, w)

    # channel_shuffle(out, 2)
    out = out.reshape(b, 2, c // 2, h, w).transpose(0, 2, 1, 3, 4)
    return out.reshape(b, c, h, w)


if __name__ == "__main__":
    B, C, H, W = 2, 32, 16, 16
    G = 8
    half = C // (2 * G)

    key = jax.random.PRNGKey(0)
    ks = jax.random.split(key, 9)
    params = {
        "cweight":    0.1 * jax.random.normal(ks[0], (half,), jnp.float32),
        "cbias":      1.0 + 0.1 * jax.random.normal(ks[1], (half,), jnp.float32),
        "sweight":    0.1 * jax.random.normal(ks[2], (half,), jnp.float32),
        "sbias":      1.0 + 0.1 * jax.random.normal(ks[3], (half,), jnp.float32),
        "gn_weight":  1.0 + 0.1 * jax.random.normal(ks[4], (half,), jnp.float32),
        "gn_bias":    0.1 * jax.random.normal(ks[5], (half,), jnp.float32),
        "sge_weight": 0.1 * jax.random.normal(ks[6], (G,), jnp.float32),
        "sge_bias":   0.1 * jax.random.normal(ks[7], (G,), jnp.float32),
    }
    x = jax.random.normal(ks[8], (B, C, H, W), jnp.float32)

    out = jax.block_until_ready(shuffle_attention(x, params, G))
    ref = jax.block_until_ready(shuffle_attention_reference(x, params, G))

    np.testing.assert_allclose(np.asarray(out), np.asarray(ref),
                               rtol=2e-4, atol=2e-5)
    print("KERNEL_OK")
</pallas_src>

<mosaic_0001>
module attributes {stable_mosaic.version = 11 : i64} {
  func.func @_shuffle_attention_kernel(%arg0: i32, %arg1: i32, %arg2: memref<1x16x256xf32, #tpu.memory_space<vmem>>, %arg3: memref<5x16x1xf32, #tpu.memory_space<vmem>>, %arg4: memref<1x16x256xf32, #tpu.memory_space<vmem>>) attributes {dimension_semantics = [#tpu.dimension_semantics<parallel>, #tpu.dimension_semantics<parallel>], iteration_bounds = array<i64: 2, 2>, scalar_prefetch = 0 : i64, scratch_operands = 0 : i64, tpu.core_type = #tpu.core_type<tc>, window_params = [{transform_indices = @transform_0, window_bounds = array<i64: 1, 16, 256>}, {transform_indices = @transform_1, window_bounds = array<i64: 5, 16, 1>}, {transform_indices = @transform_2, window_bounds = array<i64: 1, 16, 256>}]} {
    %c0 = arith.constant 0 : index
    %c0_0 = arith.constant 0 : index
    %c0_1 = arith.constant 0 : index
    %0 = vector.load %arg2[%c0, %c0_0, %c0_1] : memref<1x16x256xf32, #tpu.memory_space<vmem>>, vector<1x16x256xf32>
    %1 = vector.shape_cast %0 : vector<1x16x256xf32> to vector<16x256xf32>
    %c0_2 = arith.constant 0 : index
    %c0_3 = arith.constant 0 : index
    %c0_4 = arith.constant 0 : index
    %2 = vector.load %arg3[%c0_2, %c0_3, %c0_4] : memref<5x16x1xf32, #tpu.memory_space<vmem>>, vector<1x16x1xf32>
    %3 = vector.shape_cast %2 : vector<1x16x1xf32> to vector<16x1xf32>
    %c1 = arith.constant 1 : index
    %c0_5 = arith.constant 0 : index
    %c0_6 = arith.constant 0 : index
    %4 = vector.load %arg3[%c1, %c0_5, %c0_6] : memref<5x16x1xf32, #tpu.memory_space<vmem>>, vector<1x16x1xf32>
    %5 = vector.shape_cast %4 : vector<1x16x1xf32> to vector<16x1xf32>
    %c2 = arith.constant 2 : index
    %c0_7 = arith.constant 0 : index
    %c0_8 = arith.constant 0 : index
    %6 = vector.load %arg3[%c2, %c0_7, %c0_8] : memref<5x16x1xf32, #tpu.memory_space<vmem>>, vector<1x16x1xf32>
    %7 = vector.shape_cast %6 : vector<1x16x1xf32> to vector<16x1xf32>
    %c3 = arith.constant 3 : index
    %c0_9 = arith.constant 0 : index
    %c0_10 = arith.constant 0 : index
    %8 = vector.load %arg3[%c3, %c0_9, %c0_10] : memref<5x16x1xf32, #tpu.memory_space<vmem>>, vector<1x16x1xf32>
    %9 = vector.shape_cast %8 : vector<1x16x1xf32> to vector<16x1xf32>
    %c4 = arith.constant 4 : index
    %c0_11 = arith.constant 0 : index
    %c0_12 = arith.constant 0 : index
    %10 = vector.load %arg3[%c4, %c0_11, %c0_12] : memref<5x16x1xf32, #tpu.memory_space<vmem>>, vector<1x16x1xf32>
    %11 = vector.shape_cast %10 : vector<1x16x1xf32> to vector<16x1xf32>
    %cst = arith.constant dense<0.000000e+00> : vector<16xf32>
    %12 = vector.multi_reduction <add>, %1, %cst [1] : vector<16x256xf32> to vector<16xf32>
    %13 = vector.shape_cast %12 : vector<16xf32> to vector<16x1xf32>
    %14 = arith.mulf %1, %1 : vector<16x256xf32>
    %cst_13 = arith.constant dense<0.000000e+00> : vector<16xf32>
    %15 = vector.multi_reduction <add>, %14, %cst_13 [1] : vector<16x256xf32> to vector<16xf32>
    %16 = vector.shape_cast %15 : vector<16xf32> to vector<16x1xf32>
    %cst_14 = arith.constant 3.906250e-03 : f32
    %17 = vector.broadcast %cst_14 : f32 to vector<16x1xf32>
    %18 = arith.mulf %13, %17 : vector<16x1xf32>
    %cst_15 = arith.constant 3.906250e-03 : f32
    %19 = vector.broadcast %cst_15 : f32 to vector<16x1xf32>
    %20 = arith.mulf %16, %19 : vector<16x1xf32>
    %21 = arith.mulf %18, %18 : vector<16x1xf32>
    %22 = arith.subf %20, %21 : vector<16x1xf32>
    %cst_16 = arith.constant 0.000000e+00 : f32
    %23 = vector.broadcast %cst_16 : f32 to vector<16x1xf32>
    %24 = arith.maximumf %22, %23 : vector<16x1xf32>
    %25 = vector.broadcast %18 : vector<16x1xf32> to vector<16x256xf32>
    %26 = arith.subf %1, %25 : vector<16x256xf32>
    %cst_17 = arith.constant 9.99999974E-6 : f32
    %27 = vector.broadcast %cst_17 : f32 to vector<16x1xf32>
    %28 = arith.addf %24, %27 : vector<16x1xf32>
    %29 = math.rsqrt %28 : vector<16x1xf32>
    %30 = vector.broadcast %29 : vector<16x1xf32> to vector<16x256xf32>
    %31 = arith.mulf %26, %30 : vector<16x256xf32>
    %32 = arith.mulf %5, %18 : vector<16x1xf32>
    %33 = arith.addf %32, %7 : vector<16x1xf32>
    %34 = vector.broadcast %3 : vector<16x1xf32> to vector<16x256xf32>
    %35 = arith.mulf %34, %31 : vector<16x256xf32>
    %36 = vector.broadcast %33 : vector<16x1xf32> to vector<16x256xf32>
    %37 = arith.addf %35, %36 : vector<16x256xf32>
    %cst_18 = arith.constant 5.000000e-01 : f32
    %38 = vector.broadcast %cst_18 : f32 to vector<16x256xf32>
    %39 = arith.mulf %38, %37 : vector<16x256xf32>
    %40 = math.tanh %39 : vector<16x256xf32>
    %cst_19 = arith.constant 5.000000e-01 : f32
    %41 = vector.broadcast %cst_19 : f32 to vector<16x256xf32>
    %42 = arith.mulf %41, %40 : vector<16x256xf32>
    %cst_20 = arith.constant 5.000000e-01 : f32
    %43 = vector.broadcast %cst_20 : f32 to vector<16x256xf32>
    %44 = arith.addf %42, %43 : vector<16x256xf32>
    %45 = arith.mulf %1, %44 : vector<16x256xf32>
    %cst_21 = arith.constant dense<0.000000e+00> : vector<16xf32>
    %46 = vector.multi_reduction <add>, %45, %cst_21 [1] : vector<16x256xf32> to vector<16xf32>
    %47 = vector.shape_cast %46 : vector<16xf32> to vector<16x1xf32>
    %cst_22 = arith.constant 3.906250e-03 : f32
    %48 = vector.broadcast %cst_22 : f32 to vector<16x1xf32>
    %49 = arith.mulf %47, %48 : vector<16x1xf32>
    %50 = vector.broadcast %49 : vector<16x1xf32> to vector<16x256xf32>
    %51 = arith.mulf %45, %50 : vector<16x256xf32>
    %52 = tpu.iota {dimensions = array<i32: 1>} : vector<4x16xi32>
    %53 = tpu.iota {dimensions = array<i32: 0>} : vector<4x16xi32>
    %c4_i32 = arith.constant 4 : i32
    %54 = vector.broadcast %c4_i32 : i32 to vector<4x16xi32>
    %55 = arith.muli %53, %54 : vector<4x16xi32>
    %56 = arith.cmpi sge, %52, %55 : vector<4x16xi32>
    %c1_i32 = arith.constant 1 : i32
    %57 = vector.broadcast %c1_i32 : i32 to vector<4x16xi32>
    %58 = arith.addi %53, %57 : vector<4x16xi32>
    %c4_i32_23 = arith.constant 4 : i32
    %59 = vector.broadcast %c4_i32_23 : i32 to vector<4x16xi32>
    %60 = arith.muli %58, %59 : vector<4x16xi32>
    %61 = arith.cmpi slt, %52, %60 : vector<4x16xi32>
    %62 = arith.andi %56, %61 : vector<4x16xi1>
    %63 = arith.extui %62 : vector<4x16xi1> to vector<4x16xi32>
    %64 = arith.sitofp %63 : vector<4x16xi32> to vector<4x16xf32>
    %cst_24 = arith.constant dense<0.000000e+00> : vector<4x256xf32>
    %65 = tpu.matmul %64, %51, %cst_24 {dimension_numbers = #tpu.dot_dimension_numbers<[1], [0], [0], [1], [0, 0, 1, 1], [], []>, precision = #tpu.contract_precision<fp32>} : vector<4x16xf32>, vector<16x256xf32>, vector<4x256xf32> -> vector<4x256xf32>
    %cst_25 = arith.constant dense<0.000000e+00> : vector<4xf32>
    %66 = vector.multi_reduction <add>, %65, %cst_25 [1] : vector<4x256xf32> to vector<4xf32>
    %67 = vector.shape_cast %66 : vector<4xf32> to vector<4x1xf32>
    %68 = arith.mulf %65, %65 : vector<4x256xf32>
    %cst_26 = arith.constant dense<0.000000e+00> : vector<4xf32>
    %69 = vector.multi_reduction <add>, %68, %cst_26 [1] : vector<4x256xf32> to vector<4xf32>
    %70 = vector.shape_cast %69 : vector<4xf32> to vector<4x1xf32>
    %cst_27 = arith.constant 3.906250e-03 : f32
    %71 = vector.broadcast %cst_27 : f32 to vector<4x1xf32>
    %72 = arith.mulf %67, %71 : vector<4x1xf32>
    %cst_28 = arith.constant 2.560000e+02 : f32
    %73 = vector.broadcast %cst_28 : f32 to vector<4x1xf32>
    %74 = arith.mulf %73, %72 : vector<4x1xf32>
    %75 = arith.mulf %74, %72 : vector<4x1xf32>
    %76 = arith.subf %70, %75 : vector<4x1xf32>
    %cst_29 = arith.constant 0.000000e+00 : f32
    %77 = vector.broadcast %cst_29 : f32 to vector<4x1xf32>
    %78 = arith.maximumf %76, %77 : vector<4x1xf32>
    %cst_30 = arith.constant 0.00392156886 : f32
    %79 = vector.broadcast %cst_30 : f32 to vector<4x1xf32>
    %80 = arith.mulf %78, %79 : vector<4x1xf32>
    %81 = math.rsqrt %80 : vector<4x1xf32>
    %82 = vector.broadcast %72 : vector<4x1xf32> to vector<4x256xf32>
    %83 = arith.subf %65, %82 : vector<4x256xf32>
    %84 = vector.broadcast %81 : vector<4x1xf32> to vector<4x256xf32>
    %85 = arith.mulf %83, %84 : vector<4x256xf32>
    %86 = tpu.iota {dimensions = array<i32: 0>} : vector<16x4xi32>
    %87 = tpu.iota {dimensions = array<i32: 1>} : vector<16x4xi32>
    %c4_i32_31 = arith.constant 4 : i32
    %88 = vector.broadcast %c4_i32_31 : i32 to vector<16x4xi32>
    %89 = arith.muli %87, %88 : vector<16x4xi32>
    %90 = arith.cmpi sge, %86, %89 : vector<16x4xi32>
    %c1_i32_32 = arith.constant 1 : i32
    %91 = vector.broadcast %c1_i32_32 : i32 to vector<16x4xi32>
    %92 = arith.addi %87, %91 : vector<16x4xi32>
    %c4_i32_33 = arith.constant 4 : i32
    %93 = vector.broadcast %c4_i32_33 : i32 to vector<16x4xi32>
    %94 = arith.muli %92, %93 : vector<16x4xi32>
    %95 = arith.cmpi slt, %86, %94 : vector<16x4xi32>
    %96 = arith.andi %90, %95 : vector<16x4xi1>
    %97 = arith.extui %96 : vector<16x4xi1> to vector<16x4xi32>
    %98 = arith.sitofp %97 : vector<16x4xi32> to vector<16x4xf32>
    %99 = vector.broadcast %9 : vector<16x1xf32> to vector<16x4xf32>
    %100 = arith.mulf %98, %99 : vector<16x4xf32>
    %cst_34 = arith.constant dense<0.000000e+00> : vector<16x256xf32>
    %101 = tpu.matmul %100, %85, %cst_34 {dimension_numbers = #tpu.dot_dimension_numbers<[1], [0], [0], [1], [0, 0, 1, 1], [], []>, precision = #tpu.contract_precision<fp32>} : vector<16x4xf32>, vector<4x256xf32>, vector<16x256xf32> -> vector<16x256xf32>
    %102 = vector.broadcast %11 : vector<16x1xf32> to vector<16x256xf32>
    %103 = arith.addf %101, %102 : vector<16x256xf32>
    %cst_35 = arith.constant 5.000000e-01 : f32
    %104 = vector.broadcast %cst_35 : f32 to vector<16x256xf32>
    %105 = arith.mulf %104, %103 : vector<16x256xf32>
    %106 = math.tanh %105 : vector<16x256xf32>
    %cst_36 = arith.constant 5.000000e-01 : f32
    %107 = vector.broadcast %cst_36 : f32 to vector<16x256xf32>
    %108 = arith.mulf %107, %106 : vector<16x256xf32>
    %cst_37 = arith.constant 5.000000e-01 : f32
    %109 = vector.broadcast %cst_37 : f32 to vector<16x256xf32>
    %110 = arith.addf %108, %109 : vector<16x256xf32>
    %111 = arith.mulf %45, %110 : vector<16x256xf32>
    %c0_38 = arith.constant 0 : index
    %c0_39 = arith.constant 0 : index
    %c0_40 = arith.constant 0 : index
    %112 = vector.load %arg4[%c0_38, %c0_39, %c0_40] : memref<1x16x256xf32, #tpu.memory_space<vmem>>, vector<1x16x256xf32>
    %113 = vector.shape_cast %112 : vector<1x16x256xf32> to vector<16x256xf32>
    %114 = vector.shape_cast %111 : vector<16x256xf32> to vector<1x16x256xf32>
    tpu.vector_store %arg4[%c0_38, %c0_39, %c0_40], %114 {strides = array<i32>} : memref<1x16x256xf32, #tpu.memory_space<vmem>>, vector<1x16x256xf32>,
    return
  }
  func.func @transform_0(%arg0: i32, %arg1: i32) -> (i32, i32, i32) {
    %c0_i32 = arith.constant 0 : i32
    %c0_i32_0 = arith.constant 0 : i32
    return %arg0, %arg1, %c0_i32 : i32, i32, i32
  }
  func.func @transform_1(%arg0: i32, %arg1: i32) -> (i32, i32, i32) {
    %c0_i32 = arith.constant 0 : i32
    %c0_i32_0 = arith.constant 0 : i32
    %c0_i32_1 = arith.constant 0 : i32
    return %c0_i32, %arg1, %c0_i32_0 : i32, i32, i32
  }
  func.func @transform_2(%arg0: i32, %arg1: i32) -> (i32, i32, i32) {
    %c0_i32 = arith.constant 0 : i32
    %c0_i32_0 = arith.constant 0 : i32
    return %arg0, %c0_i32, %arg1 : i32, i32, i32
  }
}

</mosaic_0001>

<bundles_post_ra>
// kernel: tpu_custom_call.1
= control target key start
LH: loop header
LB: loop body
LE: loop exit
PB: predicated region body
PF: predicated region fallthrough
CT: control target
= control target key end

     0   :  { %7 = vsyncpa [#allocation4], 0  ;;  %s2258_s0 = inlined_call_operand.vmem [shape: f32[2,32,256], index: 0, kind: input, shape index: {}]   ;;  %s2259_s1 = inlined_call_operand.vmem [shape: f32[5,32,1], index: 1, kind: input, shape index: {}]   ;;  %s2260_s2 = inlined_call_operand.hbm [shape: f32[2,16,512], index: 2, kind: output, shape index: {}]  }
   0x1   :  { %9 = vsyncpa [#allocation4 + $0x1], 0  ;;  %s1969_s9 = smov 0   ;;  %s1971_s10 = smov 0  }
   0x2   :  { %s1973_s11 = smov 0   ;;  %s1975_s12 = smov 0  }
   0x3   :  { %s1977_s13 = smov 0   ;;  %s1979_s14 = smov 0  }
   0x4   :  { %s1981_s15 = smov 0   ;;  %s1983_s16 = smov 0  }
   0x5   :  { %s1985_s17 = smov 0   ;;  %s1987_s18 = smov 0  }
   0x6 LB: > { %s1625_s19 = sadd.s32 4294967295, %s1946_s18   ;;  %s1626_s20 = sadd.s32 4294967294, %s1946_s18   ;;  %s1946_s18 = sphi %s1987_s18, %s15_s18   ;;  %s1942_s17 = sphi %s1985_s17, %s2272_s17   ;;  %s1938_s16 = sphi %s1983_s16, %s2271_s16   ;;  %s1934_s15 = sphi %s1981_s15, %s2270_s15   ;;  %s1930_s14 = sphi %s1979_s14, %s2269_s14   ;;  %s1926_s13 = sphi %s1977_s13, %s2268_s13   ;;  %s1922_s12 = sphi %s1975_s12, %s2267_s12   ;;  %s1918_s11 = sphi %s1973_s11, %s2266_s11   ;;  %s1914_s10 = sphi %s1971_s10, %s2265_s10   ;;  %s1910_s9 = sphi %s1969_s9, %s2264_s9  }
   0x7   : > { %s24_s21 = sadd.s32 1, %s1938_s16  ;;  %s27_s22 = sadd.s32 1, %s1942_s17 }
   0x8   : > { %p25_p0 = scmp.ge.s32.totalorder %s24_s21, 2  ;;  %s62_s23 = sadd.s32 1, %s1926_s13 }
   0x9   : > { %p69_p1 = scmp.ne.s32.totalorder %s1926_s13, %s1922_s12  ;;  %p70_p2 = scmp.eq.s32.totalorder %s1946_s18, 0 }
   0xa   : > { %s2274_s21 = smov (%p25_p0, %s24_s21), 0  ;;  %s2276_s22 = smov (!%p25_p0, %s27_s22), %s1942_s17 }
   0xb   : > { %s59_s24 = ssub.s32 %s1938_s16, %s2274_s21  ;;  %p2032_p3 = por %p70_p2, %p69_p1 }
   0xc   : > { %p29_p4 = scmp.ge.s32.totalorder %s2276_s22, 2  ;;  %p60_p5 = scmp.eq.s32.totalorder %s59_s24, 0 }
   0xd   : > { %s90_s26 = sadd.s32 1, %s1918_s11  ;;  %p100_p6 = scmp.ne.s32.totalorder %s1918_s11, %s1914_s10 }
   0xe   : > { %s2278_s22 = smov (%p29_p4, %s2276_s22), 0  ;;  %p101_p7 = scmp.eq.s32.totalorder %s1625_s19, 3 }
   0xf   : > { %s2042_s27 = scalar_select %p60_p5, %s1926_s13, %s62_s23  }
  0x10   : > { %s85_s28 = ssub.s32 %s1942_s17, %s2278_s22  ;;  %p106_p8 = scmp.ne.s32.totalorder %s1914_s10, %s1910_s9 }
  0x11   : > { %s87_s29 = sor.u32 %s85_s28, %s59_s24  ;;  %p2048_p10 = por %p101_p7, %p100_p6 }
  0x12   : > { %p88_p9 = scmp.eq.s32.totalorder %s87_s29, 0  ;;  %p107_p11 = scmp.eq.s32.totalorder %s1626_s20, 3 }
  0x13   : > { %p1628_p13 = scmp.ge.s32.totalorder %s1946_s18, 4 }
  0x14   : > { %s2053_s3 = scalar_select %p88_p9, %s1918_s11, %s90_s26  }
  0x15   : > { %p2055_p12 = por %p107_p11, %p106_p8  ;;  %123 = sbr.rel (%p1628_p13) target bundleno = 37 (0x25), region = 16 }
  0x1c   : > { %140 = sbr.rel (!%p2032_p3) target bundleno = 37 (0x25), region = 24  ;;  %s142_s5 = sand.u32 (%p2032_p3), 1, %s1926_s13  }
  0x1d   : > { %s1657_s6 = sshll.u32 (%p2032_p3), %s1938_s16, 4  ;;  %s1718_s7 = smul.u32 (%p2032_p3), 80, %s142_s5 }
  0x1e   : > { %s147_s20 = scalar_lea.vmem (%p2032_p3), %s2259_s1, %s1657_s6 }
  0x1f   : > { %v193_v0 = vld [vmem:[%s147_s20] sm:$0xff] (%p2032_p3)  ;;  %v195_v1 = vld [vmem:[%s147_s20 + $0x8] sm:$0xff] (%p2032_p3)  ;;  %s144_s23 = scalar_lea.vmem (%p2032_p3), [#allocation2], %s1718_s7 }
  0x20   : > { %v197_v2 = vld [vmem:[%s147_s20 + $0x20] sm:$0xff] (%p2032_p3)  ;;  %v199_v3 = vld [vmem:[%s147_s20 + $0x28] sm:$0xff] (%p2032_p3)  ;;  %194 = vst [vmem:[%s144_s23] sm:$0xff] (%p2032_p3), %v193_v0  ;;  %196 = vst [vmem:[%s144_s23 + $0x8] sm:$0xff] (%p2032_p3), %v195_v1 }
  0x21   : > { %v201_v4 = vld [vmem:[%s147_s20 + $0x40] sm:$0xff] (%p2032_p3)  ;;  %v203_v5 = vld [vmem:[%s147_s20 + $0x48] sm:$0xff] (%p2032_p3)  ;;  %198 = vst [vmem:[%s144_s23 + $0x10] sm:$0xff] (%p2032_p3), %v197_v2  ;;  %200 = vst [vmem:[%s144_s23 + $0x18] sm:$0xff] (%p2032_p3), %v199_v3 }
  0x22   : > { %202 = vst [vmem:[%s144_s23 + $0x20] sm:$0xff] (%p2032_p3), %v201_v4  ;;  %204 = vst [vmem:[%s144_s23 + $0x28] sm:$0xff] (%p2032_p3), %v203_v5  ;;  %v205_v6 = vld [vmem:[%s147_s20 + $0x60] sm:$0xff] (%p2032_p3)  ;;  %v207_v7 = vld [vmem:[%s147_s20 + $0x68] sm:$0xff] (%p2032_p3) }
  0x23   : > { %v209_v8 = vld [vmem:[%s147_s20 + $0x80] sm:$0xff]  ;;  %206 = vst [vmem:[%s144_s23 + $0x30] sm:$0xff] %v205_v6  ;;  %208 = vst [vmem:[%s144_s23 + $0x38] sm:$0xff] %v207_v7  ;;  %v211_v9 = vld [vmem:[%s147_s20 + $0x88] sm:$0xff] }
  0x24   : > { %210 = vst [vmem:[%s144_s23 + $0x40] sm:$0xff] %v209_v8  ;;  %212 = vst [vmem:[%s144_s23 + $0x48] sm:$0xff] %v211_v9 }
  0x25 PF: > { %p1631_p0 = scmp.ge.s32.totalorder %s1946_s18, 1  ;;  %p217_p1 = scmp.lt.s32.totalorder %s1946_s18, 5 }
  0x27   : > { %p218_p2 = pnand %p1631_p0, %p217_p1 }
  0x28   : > { %s2070_s24 = sshll.u32 (!%p218_p2), %s1930_s14, 1  ;;  %p256_p3 = scmp.lt.s32.totalorder (!%p218_p2), %s1934_s15, 1  ;;  %v1948_v10 = vmov (!%p218_p2), 0   ;;  %vm400_vm3 = vcmask (!%p218_p2), 130048   ;;  %vm895_vm4 = vcmask (!%p218_p2), 1043456   ;;  %vm955_vm11 = vcmask (!%p218_p2), 31744  }
  0x29   : > { %221 = sbr.rel (%p218_p2) target bundleno = 1234 (0x4d2), region = 62  ;;  %p258_p4 = scmp.lt.s32.totalorder (!%p218_p2), %s2070_s24, 3  ;;  %1812 = vset.pattern.permute.xlu0 (!%p218_p2), %v1948_v10  ;;  %1813 = vset.pattern.permute.xlu1 (!%p218_p2), %v1948_v10 }
  0x2a   : > { %s224_s14 = sand.u32 (!%p218_p2), 1, %s1922_s12   ;;  %s252_s12 = sand.u32 (!%p218_p2), 1, %s1914_s10  }
  0x2b   : > { %s1719_s20 = smul.u32 (!%p218_p2), 80, %s224_s14  ;;  %s2200_s8 = scalar_lea.sflag (!%p218_p2), [#allocation4], %s252_s12 }
  0x2c   : > { %s1950_s14 = smov (!%p218_p2), [#allocation3]  }
  0x2d   : > { %s2100_s23 = scalar_lea.vmem (!%p218_p2), [#allocation2], %s1719_s20  ;;  %s1840_s20 = sshll.u32 (!%p218_p2), %s1950_s14, 4  ;;  %s1841_s20 = int_to_ptr.vmem [resolvable:$false] %s1840_s20 }
  0x2e   : > { %v273_v23 = vld [vmem:[%s2100_s23 + $0x8] sm:$0xff] (!%p218_p2)  ;;  %v272_v24 = vld [vmem:[%s2100_s23] sm:$0xff] (!%p218_p2)  ;;  %v1637_v26 = vld [vmem:[%s2100_s23 + $0x10] sm:$0xff] (!%p218_p2) }
  0x2f   : > { %v1639_v28 = vld [vmem:[%s2100_s23 + $0x20] sm:$0xff] (!%p218_p2)  ;;  %v1638_v31 = vld [vmem:[%s2100_s23 + $0x18] sm:$0xff] (!%p218_p2)  ;;  %v1640_v34 = vld [vmem:[%s2100_s23 + $0x28] sm:$0xff] (!%p218_p2) }
  0x30   : > { %s257_s25 = scalar_select %p256_p3, %s1934_s15, 1 }
  0x31   : > { %s259_s26 = scalar_select %p258_p4, %s2070_s24, 3 }
  0x32   : > { %s1635_s28 = sshll.u32 %s257_s25, 3  ;;  %s1653_s25 = sshll.u32 %s1934_s15, 3 }
  0x33   : > { %s1634_s29 = sshll.u32 %s259_s26, 1  ;;  %s1632_s26 = sshll.u32 %s252_s12, 5 }
  0x34   : > { %s262_s5 = sadd.s32 %s1635_s28, %s1634_s29  ;;  %s1519_s28 = sadd.s32 %s1653_s25, %s2070_s24 }
  0x35   : > { %s1636_s6 = sshll.u32 %s262_s5, 3  ;;  %s1654_s29 = sshll.u32 %s1519_s28, 7 }
  0x36   : > { %s264_s19 = scalar_lea.vmem %s2258_s0, %s1636_s6  ;;  %s254_s5 = scalar_lea.vmem [#allocation3], %s1632_s26 }
  0x37   : > { %v2079_v11 = vld [vmem:[%s264_s19] sm:$0xff]  ;;  %v2081_v12 = vld [vmem:[%s264_s19 + $0x8] sm:$0xff]  ;;  %v2083_v13 = vld [vmem:[%s264_s19 + $0x10] sm:$0xff]  ;;  %s1522_s6 = sshll.u32 %s254_s5, 4  ;;  %s2194_s24 = scalar_lea.hbm %s2260_s2, %s1654_s29  ;;  %s2196_s6 = int_to_ptr.vmem [resolvable:$true] %s1522_s6 }
  0x38   : > { %v286_v14 = vadd.f32 %v2081_v12, %v2079_v11  ;;  %v292_v15 = vmul.f32 %v2079_v11, %v2079_v11  ;;  %v293_v16 = vmul.f32 %v2081_v12, %v2081_v12  ;;  %v2091_v17 = vld [vmem:[%s264_s19 + $0x18] sm:$0xff]  ;;  %v294_v18 = vmul.f32 %v2083_v13, %v2083_v13  ;;  %s1836_s19 = scalar_lea.vmem %s2196_s6, 512  ;;  %p1843_p8 = scmp.lt.s32.totalorder %s2196_s6, %s1841_s20 }
  0x39   : > { %v295_v19 = vmul.f32 %v2091_v17, %v2091_v17  ;;  %v289_v21 = vadd.f32 %v2091_v17, %v2083_v13  ;;  %p1837_p5 = scmp.ne.s32.totalorder %s2196_s6, %s1836_s19 }
  0x3a   : > { %287 = vadd.xlane.f32.xlu0 %v286_v14  ;;  %v296_v20 = vadd.f32 %v293_v16, %v292_v15 }
  0x3b   : > { %v299_v22 = vadd.f32 %v295_v19, %v294_v18  ;;  %p1838_p6 = pnand %p1837_p5, %p2048_p10 }
  0x3c   : > { %297 = vadd.xlane.f32.xlu1 %v296_v20 }
  0x3d   : > { %p1839_p7 = pneg %p1838_p6 }
  0x3e   : > { %290 = vadd.xlane.f32.xlu0 %v289_v21 }
  0x40   : > { %300 = vadd.xlane.f32.xlu1 %v299_v22 }
  0x51   : > { %335 = vperm.xlu1 %1813, %v273_v23  }
  0x54   : > { %330 = vperm.xlu0 %1812, %v272_v24  }
  0xc7   : > { %v288_v25 = vpop.xlane.xlu0 %287 }
  0xc8   : > { %v302_v27 = vmul.f32 0.00390625, %v288_v25 }
  0xc9   : > { %v298_v37 = vpop.xlane.xlu1 %297 }
  0xca   : > { %v324_v29 = vmul.f32 %v1637_v26, %v302_v27  ;;  %v304_v38 = vmul.f32 0.00390625, %v298_v37  ;;  %v306_v39 = vmul.f32 %v302_v27, %v302_v27  ;;  %v312_v50 = vsub.f32 %v2079_v11, %v302_v27 }
  0xcb   : > { %v291_v30 = vpop.xlane.xlu0 %290  ;;  %v313_v51 = vsub.f32 %v2081_v12, %v302_v27 }
  0xcc   : > { %v303_v32 = vmul.f32 0.00390625, %v291_v30  ;;  %v326_v33 = vadd.f32 %v1639_v28, %v324_v29  ;;  %v308_v41 = vsub.f32 %v304_v38, %v306_v39 }
  0xcd   : > { %v301_v40 = vpop.xlane.xlu1 %300 }
  0xce   : > { %344 = vperm.xlu1 %1813, %v326_v33   ;;  %v325_v35 = vmul.f32 %v1638_v31, %v303_v32  ;;  %v305_v42 = vmul.f32 0.00390625, %v301_v40  ;;  %v307_v43 = vmul.f32 %v303_v32, %v303_v32  ;;  %v310_v44 = vmax.f32 %v308_v41, 0.0 }
  0xcf   : > { %v314_v57 = vsub.f32 %v2083_v13, %v303_v32  ;;  %v315_v58 = vsub.f32 %v2091_v17, %v303_v32  ;;  %v1949_v32 = vmov 0.0   ;;  %v388_v33 = vlaneseq }
  0xd0   : > { %v327_v36 = vadd.f32 %v1640_v34, %v325_v35  ;;  %v309_v45 = vsub.f32 %v305_v42, %v307_v43  ;;  %v316_v46 = vadd.f32 1e-05, %v310_v44  ;;  %472 = vmatprep.mubr.f32.mxu0 %v1949_v32  ;;  %1138 = vmatprep.mubr.f32.mxu1 %v1949_v32 }
  0xd1   : > { %v336_v56 = vpop.permute.xlu1 %335  ;;  %v2131_v34 = vshrl.u32 %v388_v33, 7  ;;  %v2134_v35 = vand.u32 127, %v388_v33  ;;  %v1643_v33 = vld [vmem:[%s2100_s23 + $0x40] sm:$0xff] }
  0xd2   : > { %349 = vperm.xlu1 %1813, %v327_v36   ;;  %v311_v47 = vmax.f32 %v309_v45, 0.0  ;;  %1814 = vrsqrt.f32 %v316_v46 }
  0xd3   : > { %v331_v55 = vpop.permute.xlu0 %330 }
  0xd4   : > { %v317_v48 = vadd.f32 1e-05, %v311_v47 }
  0xd6   : > { %1816 = vrsqrt.f32 %v317_v48 }
  0xdc   : > { %v1815_v49 = vpop.eup %1814 }
  0xdd   : > { %v320_v52 = vmul.f32 %v1815_v49, %v312_v50  ;;  %v321_v53 = vmul.f32 %v1815_v49, %v313_v51 }
  0xdf   : > { %v338_v59 = vmul.f32 %v331_v55, %v320_v52  ;;  %v339_v60 = vmul.f32 %v331_v55, %v321_v53 }
  0xe0   : > { %v1817_v54 = vpop.eup %1816 }
  0xe1   : > { %v322_v61 = vmul.f32 %v1817_v54, %v314_v57  ;;  %v323_v62 = vmul.f32 %v1817_v54, %v315_v58 }
  0xe3   : > { %v340_v2 = vmul.f32 %v336_v56, %v322_v61  ;;  %v341_v3 = vmul.f32 %v336_v56, %v323_v62 }
 0x14d   : > { %v345_v63 = vpop.permute.xlu1 %344 }
 0x14e   : > { %v352_v0 = vadd.f32 %v345_v63, %v338_v59  ;;  %v353_v1 = vadd.f32 %v345_v63, %v339_v60 }
 0x150   : > { %v356_v4 = vmul.f32 0.5, %v352_v0  ;;  %v357_v5 = vmul.f32 0.5, %v353_v1 }
 0x151   : > { %v350_v6 = vpop.permute.xlu1 %349 }
 0x152   : > { %1818 = vtanh.f32 %v356_v4  ;;  %v354_v7 = vadd.f32 %v350_v6, %v340_v2  ;;  %v355_v8 = vadd.f32 %v350_v6, %v341_v3 }
 0x153   : > { %1820 = vtanh.f32 %v357_v5 }
 0x154   : > { %v358_v9 = vmul.f32 0.5, %v354_v7  ;;  %v359_v10 = vmul.f32 0.5, %v355_v8 }
 0x156   : > { %1822 = vtanh.f32 %v358_v9 }
 0x157   : > { %1824 = vtanh.f32 %v359_v10 }
 0x15c   : > { %v1819_v14 = vpop.eup %1818 }
 0x15d   : > { %v1821_v15 = vpop.eup %1820  ;;  %v364_v16 = vmul.f32 0.5, %v1819_v14 }
 0x15e   : > { %v365_v18 = vmul.f32 0.5, %v1821_v15 }
 0x15f   : > { %v368_v19 = vadd.f32 0.5, %v364_v16 }
 0x160   : > { %v1823_v20 = vpop.eup %1822  ;;  %v369_v21 = vadd.f32 0.5, %v365_v18 }
 0x161   : > { %v1825_v22 = vpop.eup %1824  ;;  %v366_v23 = vmul.f32 0.5, %v1823_v20  ;;  %v2113_v24 = vmul.f32 %v368_v19, %v2079_v11 }
 0x162   : > { %v367_v25 = vmul.f32 0.5, %v1825_v22  ;;  %v2116_v26 = vmul.f32 %v369_v21, %v2081_v12  ;;  %v1641_v12 = vld [vmem:[%s2100_s23 + $0x30] sm:$0xff] }
 0x163   : > { %v370_v27 = vadd.f32 0.5, %v366_v23 }
 0x164   : > { %v371_v28 = vadd.f32 0.5, %v367_v25  ;;  %v376_v29 = vadd.f32 %v2116_v26, %v2113_v24 }
 0x165   : > { %v2121_v30 = vmul.f32 %v370_v27, %v2083_v13  ;;  %v394_v13 = vadd.s32 1, %v2131_v34 }
 0x166   : > { %377 = vadd.xlane.f32.xlu1 %v376_v29  ;;  %v2124_v31 = vmul.f32 %v371_v28, %v2091_v17  ;;  %v392_v17 = vmul.u32 4, %v2131_v34 }
 0x167   : > { %v395_v36 = vmul.u32 4, %v394_v13  ;;  %v1644_v13 = vld [vmem:[%s2100_s23 + $0x48] sm:$0xff] }
 0x168   : > { %v379_v11 = vadd.f32 %v2124_v31, %v2121_v30  ;;  %vm393_vm0 = vcmp.ge.s32.totalorder %v2134_v35, %v392_v17  ;;  %v923_v17 = vadd.s32 1, %v2134_v35 }
 0x169   : > { %vm396_vm1 = vcmp.lt.s32.totalorder %v2134_v35, %v395_v36  ;;  %v920_v36 = vmul.u32 4, %v2134_v35 }
 0x16a   : > { %380 = vadd.xlane.f32.xlu0 %v379_v11  ;;  %vm397_vm2 = vmand %vm393_vm0, %vm396_vm1 }
 0x16b   : > { %v2140_v37 = vsel %vm397_vm2, 1.0, %v1949_v32  ;;  %vm921_vm5 = vcmp.ge.s32.totalorder %v2131_v34, %v920_v36 }
 0x16c   : > { %v402_v38 = vsel %vm400_vm3, %v2140_v37, 0 }
 0x16d   : > { %v474_v40 = vsub.f32 %v402_v38, %v402_v38  ;;  %v919_v38 = vadd.s32 8, %v2131_v34 }
 0x16f   : > { %v475_v45 = vand.u32 4294901760, %v474_v40  ;;  %vm922_vm8 = vcmp.ge.s32.totalorder %v919_v38, %v920_v36 }
 0x171   : > { %v476_v53 = vsub.f32 %v474_v40, %v475_v45 }
 0x173   : > { %v477_v62 = vand.u32 4294901760, %v476_v53 }
 0x180   : > { %935 = vperm.xlu0 %1812, %v1641_v12   ;;  %v1642_v12 = vld [vmem:[%s2100_s23 + $0x38] sm:$0xff]  ;;  %s1842_s23 = scalar_lea.vmem %s1841_s20, 1024 }
 0x181   : > { %p1844_p9 = scmp.lt.s32.totalorder %s1842_s23, %s1836_s19 }
 0x183   : > { %p1845_p11 = por %p1844_p9, %p1843_p8 }
 0x185   : > { %p1846_p13 = pnand %p1845_p11, %p1839_p7 }
 0x1f3   : > { %v378_v39 = vpop.xlane.xlu1 %377 }
 0x1f4   : > { %v382_v41 = vmul.f32 0.00390625, %v378_v39 }
 0x1f6   : > { %v384_v42 = vmul.f32 %v382_v41, %v2113_v24  ;;  %v385_v43 = vmul.f32 %v382_v41, %v2116_v26 }
 0x1f7   : > { %v381_v44 = vpop.xlane.xlu0 %380 }
 0x1f8   : > { %v404_v46 = vand.u32 4294901760, %v385_v43  ;;  %v406_v47 = vand.u32 4294901760, %v384_v42  ;;  %v383_v48 = vmul.f32 0.00390625, %v381_v44 }
 0x1fa   : > { %v485_v49 = vsub.f32 %v385_v43, %v404_v46  ;;  %v491_v50 = vsub.f32 %v384_v42, %v406_v47  ;;  %v386_v51 = vmul.f32 %v383_v48, %v2121_v30  ;;  %v387_v52 = vmul.f32 %v383_v48, %v2124_v31 }
 0x1fc   : > { %v492_v54 = vand.u32 4294901760, %v491_v50  ;;  %v408_v55 = vand.u32 4294901760, %v387_v52  ;;  %v410_v56 = vand.u32 4294901760, %v386_v51  ;;  %v486_v57 = vand.u32 4294901760, %v485_v49 }
 0x1fe   : > { %v497_v58 = vsub.f32 %v387_v52, %v408_v55  ;;  %v503_v59 = vsub.f32 %v386_v51, %v410_v56  ;;  %v1658_v60 = vpack.c.bf16 %v408_v55, %v404_v46  ;;  %v1660_v61 = vpack.c.bf16 %v410_v56, %v406_v47 }
 0x1ff   : > { %v493_v63 = vsub.f32 %v491_v50, %v492_v54  ;;  %v487_v1 = vsub.f32 %v485_v49, %v486_v57  ;;  %v936_v42 = vpop.permute.xlu0 %935 }
 0x200   : > { %v504_v0 = vand.u32 4294901760, %v503_v59  ;;  %1659 = vmatprep.subr.bf16.mxu0 %v1658_v60  ;;  %v498_v2 = vand.u32 4294901760, %v497_v58  ;;  %v1666_v14 = vpack.c.bf16 %v497_v58, %v485_v49  ;;  %v1668_v15 = vpack.c.bf16 %v503_v59, %v491_v50 }
 0x201   : > { %1661 = vmatpush1.bf16.msra.mxu0 %v1660_v61  ;;  %v488_v5 = vand.u32 4294901760, %v487_v1  ;;  %v494_v7 = vand.u32 4294901760, %v493_v63 }
 0x202   : > { %v505_v3 = vsub.f32 %v503_v59, %v504_v0  ;;  %v499_v4 = vsub.f32 %v497_v58, %v498_v2  ;;  %v1674_v16 = vpack.c.bf16 %v498_v2, %v486_v57  ;;  %v1676_v18 = vpack.c.bf16 %v504_v0, %v492_v54 }
 0x204   : > { %478 = vmatmul.mubr.f32.vlgmr.msra.gmra.mrb[0].mxu0 %v477_v62  ;;  %v500_v6 = vand.u32 4294901760, %v499_v4  ;;  %v506_v8 = vand.u32 4294901760, %v505_v3 }
 0x205   : > { %568 = vmatprep.mubr.f32.mxu0 %v1949_v32 }
 0x206   : > { %v1662_v9 = vpack.c.bf16 %v500_v6, %v488_v5  ;;  %v1664_v10 = vpack.c.bf16 %v506_v8, %v494_v7 }
 0x208   : > { %1663 = vmatprep.subr.bf16.mxu0 %v1662_v9 }
 0x209   : > { %1665 = vmatpush1.bf16.msra.mxu0 %v1664_v10 }
 0x20a   : > { %1667 = vmatprep.subr.bf16.mxu0 %v1666_v14 }
 0x20c   : > { %1646 = vmatmul.mubr.msk.f32.vlgmr.msra.gmra.mrb[0].mxu0 %vm400_vm3, %v2140_v37 }
 0x20d   : > { %1669 = vmatpush1.bf16.msra.mxu0 %v1668_v15  ;;  %648 = vmatprep.mubr.f32.mxu0 %v1949_v32 }
 0x20e   : > { %1671 = vmatprep.subr.bf16.mxu0 %v1658_v60 }
 0x214   : > { %651 = vmatmul.mubr.f32.vlgmr.msra.gmra.mrb[0].mxu0 %v474_v40 }
 0x215   : > { %1673 = vmatpush1.bf16.msra.mxu0 %v1660_v61  ;;  %725 = vmatprep.mubr.f32.mxu0 %v1949_v32 }
 0x216   : > { %1675 = vmatprep.subr.bf16.mxu0 %v1674_v16 }
 0x21c   : > { %729 = vmatmul.mubr.f32.vlgmr.msra.gmra.mrb[0].mxu0 %v475_v45 }
 0x21d   : > { %1677 = vmatpush1.bf16.msra.mxu0 %v1676_v18  ;;  %811 = vmatprep.mubr.f32.mxu0 %v1949_v32 }
 0x21e   : > { %1679 = vmatprep.subr.bf16.mxu0 %v1658_v60 }
 0x224   : > { %1647 = vmatmul.mubr.msk.f32.vlgmr.msra.gmra.mrb[0].mxu0 %vm400_vm3, %v2140_v37 }
 0x225   : > { %1681 = vmatpush1.bf16.msra.mxu0 %v1660_v61  ;;  %887 = vmatprep.mubr.f32.mxu0 %v1949_v32 }
 0x22c   : > { %1648 = vmatmul.mubr.msk.f32.vlgmr.msra.gmra.mrb[0].mxu0 %vm400_vm3, %v2140_v37  ;;  %v924_v37 = vmul.u32 4, %v923_v17 }
 0x22d   : > { %1034 = vmatprep.mubr.f32.mxu0 %v1949_v32 }
 0x22e   : > { %vm925_vm6 = vcmp.lt.s32.totalorder %v2131_v34, %v924_v37  ;;  %vm926_vm9 = vcmp.lt.s32.totalorder %v919_v38, %v924_v37 }
 0x22f   : > { %vm927_vm7 = vmand %vm921_vm5, %vm925_vm6 }
 0x230   : > { %v1649_v41 = vsel %vm927_vm7, 1.0, %v1949_v32  ;;  %vm928_vm10 = vmand %vm922_vm8, %vm926_vm9 }
 0x231   : > { %v943_v35 = vmul.f32 %v1649_v41, %v936_v42  ;;  %v1650_v47 = vsel %vm928_vm10, 1.0, %v1949_v32 }
 0x233   : > { %v957_v34 = vsel %vm955_vm11, %v943_v35, 0 }
 0x234   : > { %v1035_v52 = vand.u32 4294901760, %v957_v34 }
 0x236   : > { %v1036_v54 = vsub.f32 %v957_v34, %v1035_v52 }
 0x238   : > { %v1037_v56 = vand.u32 4294901760, %v1036_v54 }
 0x23a   : > { %v1038_v63 = vsub.f32 %v1036_v54, %v1037_v56 }
 0x23c   : > { %v1039_v6 = vand.u32 4294901760, %v1038_v63 }
 0x2ff   : > { %v890_v19 = vpop.f32.mrb[0].mxu0 }
 0x300   : > { %v901_v20 = vmul.f32 %v890_v19, %v890_v19  ;;  %v892_v21 = vpop.f32.mrb[1].mxu0  ;;  %v896_v22 = vsel %vm895_vm4, %v890_v19, 0.0 }
 0x301   : > { %v902_v23 = vmul.f32 %v892_v21, %v892_v21  ;;  %v897_v25 = vsel %vm895_vm4, %v892_v21, 0.0 }
 0x302   : > { %v898_v27 = vadd.f32 %v897_v25, %v896_v22  ;;  %v903_v28 = vsel %vm895_vm4, %v901_v20, 0.0 }
 0x303   : > { %v904_v29 = vsel %vm895_vm4, %v902_v23, 0.0 }
 0x304   : > { %899 = vadd.xlane.f32.xlu1 %v898_v27  ;;  %v905_v11 = vadd.f32 %v904_v29, %v903_v28 }
 0x308   : > { %906 = vadd.xlane.f32.xlu1 %v905_v11 }
 0x319   : > { %940 = vperm.xlu1 %1813, %v1642_v12  }
 0x31d   : > { %947 = vperm.xlu1 %1813, %v1643_v33  }
 0x321   : > { %952 = vperm.xlu1 %1813, %v1644_v13  }
 0x391   : > { %v900_v39 = vpop.xlane.xlu1 %899 }
 0x392   : > { %v908_v40 = vmul.f32 0.00390625, %v900_v39 }
 0x394   : > { %v909_v43 = vmul.f32 256.0, %v908_v40  ;;  %v915_v58 = vsub.f32 %v890_v19, %v908_v40  ;;  %v916_v59 = vsub.f32 %v892_v21, %v908_v40 }
 0x395   : > { %v907_v44 = vpop.xlane.xlu1 %906 }
 0x396   : > { %v910_v45 = vmul.f32 %v909_v43, %v908_v40 }
 0x398   : > { %v911_v46 = vsub.f32 %v907_v44, %v910_v45 }
 0x399   : > { %v941_v48 = vpop.permute.xlu1 %940 }
 0x39a   : > { %v912_v49 = vmax.f32 %v911_v46, 0.0  ;;  %v944_v50 = vmul.f32 %v1650_v47, %v941_v48 }
 0x39c   : > { %v913_v51 = vmul.f32 0.003921569, %v912_v49  ;;  %v960_v53 = vsel %vm955_vm11, %v944_v50, 0 }
 0x39d   : > { %v1046_v55 = vand.u32 4294901760, %v960_v53  ;;  %v948_v25 = vpop.permute.xlu1 %947 }
 0x39e   : > { %1826 = vrsqrt.f32 %v913_v51 }
 0x39f   : > { %v1047_v57 = vsub.f32 %v960_v53, %v1046_v55 }
 0x3a1   : > { %v1048_v0 = vand.u32 4294901760, %v1047_v57  ;;  %v953_v33 = vpop.permute.xlu1 %952 }
 0x3a3   : > { %v1049_v7 = vsub.f32 %v1047_v57, %v1048_v0 }
 0x3a5   : > { %v1050_v14 = vand.u32 4294901760, %v1049_v7 }
 0x3a8   : > { %v1827_v60 = vpop.eup %1826 }
 0x3a9   : > { %v918_v61 = vmul.f32 %v1827_v60, %v916_v59  ;;  %v917_v62 = vmul.f32 %v1827_v60, %v915_v58 }
 0x3ab   : > { %v966_v1 = vsel %vm895_vm4, %v918_v61, 0  ;;  %v963_v2 = vsel %vm895_vm4, %v917_v62, 0 }
 0x3ac   : > { %v968_v3 = vand.u32 4294901760, %v966_v1  ;;  %v970_v4 = vand.u32 4294901760, %v963_v2 }
 0x3ae   : > { %969 = vmatprep.subr.mxu0 %v968_v3  ;;  %v1064_v5 = vsub.f32 %v963_v2, %v970_v4  ;;  %v1058_v8 = vsub.f32 %v966_v1, %v968_v3 }
 0x3af   : > { %971 = vmatpush1.msra.mxu0 %v970_v4 }
 0x3b0   : > { %1040 = vmatmul.mubr.f32.vlgmr.msra.gmra.mrb[2].mxu0 %v1039_v6  ;;  %v1059_v9 = vand.u32 4294901760, %v1058_v8  ;;  %v1065_v10 = vand.u32 4294901760, %v1064_v5 }
 0x3b1   : > { %1045 = vmatprep.mubr.f32.mxu0 %v1949_v32 }
 0x3b2   : > { %v1060_v15 = vsub.f32 %v1058_v8, %v1059_v9  ;;  %v1066_v16 = vsub.f32 %v1064_v5, %v1065_v10 }
 0x3b4   : > { %1051 = vmatmul.mubr.f32.gmra.mrb[4].mxu0 %v1050_v14  ;;  %v1061_v18 = vand.u32 4294901760, %v1060_v15  ;;  %v1067_v19 = vand.u32 4294901760, %v1066_v16 }
 0x3b5   : > { %1131 = vmatprep.mubr.f32.mxu0 %v1949_v32 }
 0x3b6   : > { %1062 = vmatprep.subr.mxu0 %v1061_v18  ;;  %1682 = vmatprep.subr.mxu1 %v1061_v18 }
 0x3b7   : > { %1068 = vmatpush1.msra.mxu0 %v1067_v19  ;;  %1683 = vmatpush1.msra.mxu1 %v1067_v19 }
 0x3b8   : > { %1133 = vmatmul.mubr.f32.vlgmr.msra.gmra.mrb[2].mxu0 %v1035_v52  ;;  %1140 = vmatmul.mubr.f32.vlgmr.msra.gmra.mrb[0].mxu1 %v1046_v55 }
 0x3b9   : > { %1148 = vmatprep.subr.mxu1 %v1058_v8  ;;  %1214 = vmatprep.mubr.f32.mxu1 %v1949_v32 }
 0x3ba   : > { %1151 = vmatpush1.msra.mxu1 %v1064_v5 }
 0x3bb   : > { %1232 = vmatprep.subr.mxu1 %v968_v3 }
 0x3bc   : > { %1217 = vmatmul.mubr.f32.vlgmr.msra.gmra.mrb[2].mxu1 %v1036_v54 }
 0x3bd   : > { %1234 = vmatpush1.msra.mxu1 %v970_v4  ;;  %1222 = vmatprep.mubr.f32.mxu1 %v1949_v32 }
 0x3be   : > { %1319 = vmatprep.subr.mxu1 %v1059_v9 }
 0x3c0   : > { %1225 = vmatmul.mubr.f32.gmra.mrb[0].mxu1 %v1047_v57 }
 0x3c1   : > { %1297 = vmatprep.mubr.f32.mxu1 %v1949_v32 }
 0x3c4   : > { %1301 = vmatmul.mubr.f32.vlgmr.msra.gmra.mrb[2].mxu1 %v1037_v56 }
 0x3c5   : > { %1323 = vmatpush1.msra.mxu1 %v1065_v10  ;;  %1306 = vmatprep.mubr.f32.mxu1 %v1949_v32 }
 0x3c6   : > { %1402 = vmatprep.subr.mxu1 %v968_v3 }
 0x3c8   : > { %1310 = vmatmul.mubr.f32.gmra.mrb[0].mxu1 %v1048_v0 }
 0x3c9   : > { %1386 = vmatprep.mubr.f32.mxu1 %v1949_v32 }
 0x3cc   : > { %1388 = vmatmul.mubr.f32.vlgmr.msra.gmra.mrb[2].mxu1 %v1035_v52 }
 0x3cd   : > { %1404 = vmatpush1.msra.mxu1 %v970_v4  ;;  %1393 = vmatprep.mubr.f32.mxu1 %v1949_v32 }
 0x3d0   : > { %1395 = vmatmul.mubr.f32.gmra.mrb[0].mxu1 %v1046_v55 }
 0x3d1   : > { %1467 = vmatprep.mubr.f32.mxu1 %v1949_v32 }
 0x3d4   : > { %1469 = vmatmul.mubr.f32.vlgmr.msra.gmra.mrb[2].mxu1 %v1035_v52 }
 0x3d5   : > { %1474 = vmatprep.mubr.f32.mxu1 %v1949_v32 }
 0x3d8   : > { %1476 = vmatmul.mubr.f32.gmra.mrb[0].mxu1 %v1046_v55 }
 0x487   : > { %v1052_v20 = vpop.f32.mrb[4].mxu0 }
 0x488   : > { %v1054_v21 = vpop.f32.mrb[5].mxu0  ;;  %v1053_v17 = vadd.f32 %v1052_v20, %v953_v33 }
 0x489   : > { %v1055_v37 = vadd.f32 %v1054_v21, %v953_v33 }
 0x48b   : > { %v1134_v22 = vpop.f32.mrb[2].mxu0 }
 0x48c   : > { %v1136_v23 = vpop.f32.mrb[3].mxu0  ;;  %v1684_v27 = vadd.f32 %v1134_v22, %v948_v25 }
 0x48d   : > { %v1686_v28 = vadd.f32 %v1136_v23, %v948_v25 }
 0x4a7   : > { %v1470_v29 = vpop.f32.mrb[2].mxu1 }
 0x4a8   : > { %v1685_v11 = vadd.f32 %v1684_v27, %v1470_v29  ;;  %v1472_v12 = vpop.f32.mrb[3].mxu1 }
 0x4a9   : > { %v1687_v13 = vadd.f32 %v1686_v28, %v1472_v12 }
 0x4aa   : > { %v1482_v36 = vmul.f32 0.5, %v1685_v11 }
 0x4ab   : > { %v1483_v38 = vmul.f32 0.5, %v1687_v13  ;;  %v1477_v32 = vpop.f32.mrb[0].mxu1 }
 0x4ac   : > { %1828 = vtanh.f32 %v1482_v36  ;;  %v1689_v39 = vadd.f32 %v1477_v32, %v1053_v17  ;;  %v1479_v40 = vpop.f32.mrb[1].mxu1 }
 0x4ad   : > { %1830 = vtanh.f32 %v1483_v38  ;;  %v1691_v41 = vadd.f32 %v1479_v40, %v1055_v37 }
 0x4ae   : > { %v1484_v42 = vmul.f32 0.5, %v1689_v39 }
 0x4af   : > { %v1485_v43 = vmul.f32 0.5, %v1691_v41 }
 0x4b0   : > { %1832 = vtanh.f32 %v1484_v42 }
 0x4b1   : > { %1834 = vtanh.f32 %v1485_v43 }
 0x4b6   : > { %v1829_v44 = vpop.eup %1828 }
 0x4b7   : > { %v1831_v45 = vpop.eup %1830  ;;  %v1490_v35 = vmul.f32 0.5, %v1829_v44 }
 0x4b8   : > { %v1491_v46 = vmul.f32 0.5, %v1831_v45 }
 0x4b9   : > { %v1494_v47 = vadd.f32 0.5, %v1490_v35 }
 0x4ba   : > { %v1833_v48 = vpop.eup %1832  ;;  %v1495_v49 = vadd.f32 0.5, %v1491_v46 }
 0x4bb   : > { %v1835_v34 = vpop.eup %1834  ;;  %v1498_v50 = vmul.f32 %v1494_v47, %v2113_v24  ;;  %v1492_v51 = vmul.f32 0.5, %v1833_v48 }
 0x4bc   : > { %v1499_v52 = vmul.f32 %v1495_v49, %v2116_v26  ;;  %v1493_v53 = vmul.f32 0.5, %v1835_v34 }
 0x4bd   : > { %1502 = vst [vmem:[%s254_s5] sm:$0xff] %v1498_v50  ;;  %v1496_v54 = vadd.f32 0.5, %v1492_v51 }
 0x4be   : > { %1503 = vst [vmem:[%s254_s5 + $0x8] sm:$0xff] %v1499_v52  ;;  %v1497_v55 = vadd.f32 0.5, %v1493_v53 }
 0x4bf   : > { %v1500_v24 = vmul.f32 %v1496_v54, %v2121_v30 }
 0x4c0   : > { %v1501_v56 = vmul.f32 %v1497_v55, %v2124_v31 }
 0x4c1   : > { %1504 = vst [vmem:[%s254_s5 + $0x10] sm:$0xff] %v1500_v24 }
 0x4c2   : > { %1505 = vst [vmem:[%s254_s5 + $0x18] sm:$0xff] %v1501_v56 }
 0x4c3   : > { %1849 = shalt.err (!%p1846_p13)
}
 0x4c4   : > { %s1850_s12 = scalar_lea.hbm %s2194_s24, 512  ;;  %s1854_s28 = scalar_lea.hbm %s2260_s2, 2048 }
 0x4c5   : > { %p1851_p0 = scmp.ne.s32.totalorder %s2194_s24, %s1850_s12  ;;  %p1855_p3 = scmp.lt.u32.totalorder %s2194_s24, %s2260_s2 }
 0x4c6   : > { %p1856_p4 = scmp.lt.u32.totalorder %s1854_s28, %s1850_s12  ;;  %p1858_p6 = scmp.lt.u32.totalorder %s1850_s12, %s2194_s24 }
 0x4c7   : > { %p1852_p1 = pnand %p1851_p0, %p2048_p10 }
 0x4c8   : > { %p1857_p5 = por %p1856_p4, %p1855_p3 }
 0x4c9   : > { %p1853_p2 = pneg %p1852_p1 }
 0x4ca   : > { %p1859_p7 = por %p1858_p6, %p1857_p5 }
 0x4cc   : > { %p1860_p8 = pnand %p1859_p7, %p1853_p2 }
 0x4ce   : > { %1863 = shalt.err (!%p1860_p8)
}
 0x4cf   : > { %s1951_s15 = smov 256   ;;  %s1952_s7 = smov 512  }
 0x4d0   : > { %s1953_s19 = smov 16  }
 0x4d1   : > { %1720 = dma.vmem_to_hbm [thread:$0]  (%p2048_p10), %s2196_s6, 512, %s2194_s24, %s2200_s8, %s1951_s15, %s1952_s7, %s1953_s19  }
 0x4d2 PF: > { %p1726_p9 = scmp.ge.s32.totalorder %s1946_s18, 2  ;;  %s1537_s14 = sand.u32 1, %s1910_s9  }
 0x4d3   : > { %s1538_s20 = scalar_lea.sflag [#allocation4], %s1537_s14 }
 0x4d4   : > { %p1723_p11 = pnand %p1726_p9, %p2055_p12 }
 0x4d6   : > { %1905 = dma.done.wait (!%p1723_p11), %s1538_s20, 512  }
 0x4d7   : > { %1907 = vsyncadd (!%p1723_p11), %s1538_s20, 4294966784  ;;  %s15_s18 = sadd.s32 1, %s1946_s18   ;;  %s2264_s9 = smov %s1914_s10 }
 0x4d8   : > { %p12_p13 = scmp.ge.s32.totalorder %s15_s18, 6   ;;  %s2265_s10 = smov %s1918_s11 }
 0x4d9   : > { %s2266_s11 = smov %s2053_s3  ;;  %s2267_s12 = smov %s1926_s13 }
 0x4da   : > { %s2268_s13 = smov %s2042_s27  ;;  %s2269_s14 = smov %s1938_s16 }
 0x4db   : > { %s2270_s15 = smov %s1942_s17  ;;  %s2271_s16 = smov %s2274_s21 }
 0x4dc   : > { %s2272_s17 = smov %s2278_s22  ;;  %14 = sbr.rel (!%p12_p13) target bundleno = 6 (0x6), region = 113 }
 0x4e3   :  { %1543 = vsyncpa [#allocation4], 1 }
 0x4e4   :  { %1545 = vsyncpa [#allocation4 + $0x1], 1 }

</bundles_post_ra>
